<compile_context>
chip_gen: v6e
topology: v6e:2x2x1
jax: 0.10.0
libtpu: 0.0.40
codegen_flags: <defaults>
</compile_context>

<pallas_src>
import jax
import jax.numpy as jnp
from jax import lax
from jax.experimental import pallas as pl
from jax.experimental.pallas import tpu as pltpu

HIDDEN = 64
G4 = 4 * HIDDEN          # 256 gate columns, kernel order [i, f, o, g]
IN_DIM = 2
T_ENC = 20
T_DEC = 30
BATCH_TILE = 8           # sublane-aligned batch tile


# ----------------------------------------------------------------------------
# Kernel
# ----------------------------------------------------------------------------
def lstm_model_kernel(
    x_ref,        # (T_ENC, Bb, 2)   time-major encoder inputs (one batch tile)
    w_ih_e_ref,   # (2, 256)         encoder W_ih^T   (gate cols [i,f,o,g])
    w_hh_e_ref,   # (64, 256)        encoder W_hh^T
    b_e_ref,      # (1, 256)         encoder b_ih + b_hh
    w_dec_ref,    # (64, 256)        decoder (W_ih + W_hh)^T  (folded)
    b_d_ref,      # (1, 256)         decoder b_ih + b_hh
    w_emb_ref,    # (64, 2)          embedding_pos W^T
    b_emb_ref,    # (1, 2)           embedding_pos b
    out_ref,      # (T_DEC, Bb, 2)   time-major decoder outputs
    x_proj_ref,   # scratch (T_ENC, Bb, 256)
    h_all_ref,    # scratch (T_DEC, Bb, 64)
):
    Bb = x_ref.shape[1]

    # --- one-time encoder input pre-projection (K=2 -> two VPU broadcast
    # multiply-adds, encoder bias folded in; off the recurrence critical path).
    x = x_ref[...]                                    # (T_ENC, Bb, 2)
    w0 = w_ih_e_ref[0:1, :].reshape(1, 1, G4)
    w1 = w_ih_e_ref[1:2, :].reshape(1, 1, G4)
    b_e = b_e_ref[...].reshape(1, 1, G4)
    x_proj_ref[...] = x[:, :, 0:1] * w0 + x[:, :, 1:2] * w1 + b_e

    def gates_to_hc(gates, c):
        # gates columns are [i | f | o | g]; only 128-lane-aligned slices of
        # the fresh matmul result; transcendental pushes are whole vregs
        # (the unused o/g lanes are free EUP filler).
        lo = gates[:, : 2 * HIDDEN]                   # [i | f]
        hi = gates[:, 2 * HIDDEN:]                    # [o | g]
        sig_lo = jax.nn.sigmoid(lo)
        sig_hi = jax.nn.sigmoid(hi)
        tnh_hi = jnp.tanh(hi)
        i_g = sig_lo[:, :HIDDEN]
        f_g = sig_lo[:, HIDDEN:]
        o_g = sig_hi[:, :HIDDEN]
        g_g = tnh_hi[:, HIDDEN:]
        c_new = f_g * c + i_g * g_g
        h_new = o_g * jnp.tanh(c_new)
        return h_new, c_new

    h0 = jnp.zeros((Bb, HIDDEN), jnp.float32)
    c0 = jnp.zeros((Bb, HIDDEN), jnp.float32)

    # --- encoder: one (Bb,64)@(64,256) matmul per step; input proj precomputed.
    w_hh_e = w_hh_e_ref[...]

    def enc_step(t, carry):
        h, c = carry
        gates = x_proj_ref[t] + jnp.dot(
            h, w_hh_e, preferred_element_type=jnp.float32)
        return gates_to_hc(gates, c)

    h, c = lax.fori_loop(0, T_ENC, enc_step, (h0, c0))

    # --- decoder: input == h, folded weight -> one matmul per step.
    # Weight load + bias broadcast hoisted to just before the loop.
    w_dec = w_dec_ref[...]
    b_d = jnp.broadcast_to(b_d_ref[...], (Bb, G4))

    def dec_step(t, carry):
        h, c = carry
        gates = jnp.dot(h, w_dec, preferred_element_type=jnp.float32) + b_d
        h, c = gates_to_hc(gates, c)
        h_all_ref[t] = h                              # aligned (Bb, 64) store
        return (h, c)

    lax.fori_loop(0, T_DEC, dec_step, (h, c))

    # --- one embedding matmul + one output store for all 30 decoder steps.
    h_flat = h_all_ref[...].reshape(T_DEC * Bb, HIDDEN)
    out = jnp.dot(h_flat, w_emb_ref[...],
                  preferred_element_type=jnp.float32) + b_emb_ref[...]
    out_ref[...] = out.reshape(T_DEC, Bb, IN_DIM)


# ----------------------------------------------------------------------------
# Wrapper
# ----------------------------------------------------------------------------
def lstm_model_forward(x, kparams):
    """x: (B, T_ENC, 2) float32. kparams: kernel-layout weights (see below)."""
    B = x.shape[0]
    B_pad = ((B + BATCH_TILE - 1) // BATCH_TILE) * BATCH_TILE
    nb = B_pad // BATCH_TILE

    # Time-major (T_ENC, B_pad, 2); padded rows are zeros (discarded at the end).
    x_tm = jnp.transpose(x, (1, 0, 2))
    if B_pad != B:
        x_tm = jnp.pad(x_tm, ((0, 0), (0, B_pad - B), (0, 0)))

    args = (
        x_tm,
        kparams["w_ih_enc_t"], kparams["w_hh_enc_t"], kparams["b_enc"],
        kparams["w_dec_t"], kparams["b_dec"],
        kparams["w_emb_t"], kparams["b_emb"],
    )

    out_tm = pl.pallas_call(
        lstm_model_kernel,
        out_shape=jax.ShapeDtypeStruct((T_DEC, B_pad, IN_DIM), jnp.float32),
        grid_spec=pltpu.PrefetchScalarGridSpec(
            num_scalar_prefetch=0,
            grid=(nb,),
            in_specs=[
                pl.BlockSpec((T_ENC, BATCH_TILE, IN_DIM), lambda b: (0, b, 0)),
                pl.BlockSpec((IN_DIM, G4), lambda b: (0, 0)),
                pl.BlockSpec((HIDDEN, G4), lambda b: (0, 0)),
                pl.BlockSpec((1, G4), lambda b: (0, 0)),
                pl.BlockSpec((HIDDEN, G4), lambda b: (0, 0)),
                pl.BlockSpec((1, G4), lambda b: (0, 0)),
                pl.BlockSpec((HIDDEN, IN_DIM), lambda b: (0, 0)),
                pl.BlockSpec((1, IN_DIM), lambda b: (0, 0)),
            ],
            out_specs=pl.BlockSpec((T_DEC, BATCH_TILE, IN_DIM),
                                   lambda b: (0, b, 0)),
            scratch_shapes=[
                pltpu.VMEM((T_ENC, BATCH_TILE, G4), jnp.float32),     # x_proj
                pltpu.VMEM((T_DEC, BATCH_TILE, HIDDEN), jnp.float32), # dec h's
            ],
        ),
        compiler_params=pltpu.CompilerParams(
            dimension_semantics=("parallel",)),
    )(*args)

    # (T_DEC, B_pad, 2) time-major -> (B, T_DEC, 2)
    return jnp.transpose(out_tm[:, :B, :], (1, 0, 2))


# ----------------------------------------------------------------------------
# Parameter construction
# ----------------------------------------------------------------------------
def init_raw_params(key):
    """Raw PyTorch-layout parameters: W_ih (4H, in), W_hh (4H, H), b (4H,)."""
    ks = jax.random.split(key, 10)
    k_lstm = 1.0 / jnp.sqrt(HIDDEN)
    k_lin = 1.0 / jnp.sqrt(HIDDEN)

    def u(k, shape, bound):
        return jax.random.uniform(k, shape, jnp.float32, -bound, bound)

    return {
        "w_ih_enc": u(ks[0], (G4, IN_DIM), k_lstm),
        "w_hh_enc": u(ks[1], (G4, HIDDEN), k_lstm),
        "b_ih_enc": u(ks[2], (G4,), k_lstm),
        "b_hh_enc": u(ks[3], (G4,), k_lstm),
        "w_ih_dec": u(ks[4], (G4, HIDDEN), k_lstm),
        "w_hh_dec": u(ks[5], (G4, HIDDEN), k_lstm),
        "b_ih_dec": u(ks[6], (G4,), k_lstm),
        "b_hh_dec": u(ks[7], (G4,), k_lstm),
        "w_emb": u(ks[8], (IN_DIM, HIDDEN), k_lin),
        "b_emb": u(ks[9], (IN_DIM,), k_lin),
    }


def _permute_gate_cols(w):
    """(.., 4H) columns: PyTorch order [i, f, g, o] -> kernel order [i, f, o, g]."""
    H = HIDDEN
    return jnp.concatenate(
        [w[:, : 2 * H], w[:, 3 * H:], w[:, 2 * H: 3 * H]], axis=1)


def prepare_kernel_params(raw):
    """Pre-transpose, permute gate columns, fold decoder weights & biases."""
    return {
        "w_ih_enc_t": _permute_gate_cols(raw["w_ih_enc"].T),            # (2, 256)
        "w_hh_enc_t": _permute_gate_cols(raw["w_hh_enc"].T),            # (64, 256)
        "b_enc": _permute_gate_cols(
            (raw["b_ih_enc"] + raw["b_hh_enc"])[None, :]),              # (1, 256)
        "w_dec_t": _permute_gate_cols(
            (raw["w_ih_dec"] + raw["w_hh_dec"]).T),                     # (64, 256)
        "b_dec": _permute_gate_cols(
            (raw["b_ih_dec"] + raw["b_hh_dec"])[None, :]),              # (1, 256)
        "w_emb_t": raw["w_emb"].T,                                      # (64, 2)
        "b_emb": raw["b_emb"][None, :],                                 # (1, 2)
    }


# ----------------------------------------------------------------------------
# Pure-JAX reference of the PyTorch forward (raw, unpermuted weights)
# ----------------------------------------------------------------------------
def reference_forward(x, raw):
    B = x.shape[0]
    h = jnp.zeros((B, HIDDEN), jnp.float32)
    c = jnp.zeros((B, HIDDEN), jnp.float32)

    def cell(xt, h, c, w_ih, w_hh, b_ih, b_hh):
        gates = xt @ w_ih.T + h @ w_hh.T + b_ih + b_hh
        i_g = jax.nn.sigmoid(gates[:, 0 * HIDDEN:1 * HIDDEN])
        f_g = jax.nn.sigmoid(gates[:, 1 * HIDDEN:2 * HIDDEN])
        g_g = jnp.tanh(gates[:, 2 * HIDDEN:3 * HIDDEN])
        o_g = jax.nn.sigmoid(gates[:, 3 * HIDDEN:4 * HIDDEN])
        c_n = f_g * c + i_g * g_g
        return o_g * jnp.tanh(c_n), c_n

    for t in range(T_ENC):
        h, c = cell(x[:, t, :], h, c, raw["w_ih_enc"], raw["w_hh_enc"],
                    raw["b_ih_enc"], raw["b_hh_enc"])
    outs = []
    for _ in range(T_DEC):
        h, c = cell(h, h, c, raw["w_ih_dec"], raw["w_hh_dec"],
                    raw["b_ih_dec"], raw["b_hh_dec"])
        outs.append(h @ raw["w_emb"].T + raw["b_emb"])
    return jnp.stack(outs, axis=1)


if __name__ == "__main__":
    key = jax.random.PRNGKey(0)
    k_param, k_x = jax.random.split(key)

    B = 2
    x = jax.random.normal(k_x, (B, T_ENC, IN_DIM), jnp.float32)  # 'train_agent'

    raw = init_raw_params(k_param)
    kparams = prepare_kernel_params(raw)

    pred = jax.block_until_ready(lstm_model_forward(x, kparams))
    assert pred.shape == (B, T_DEC, IN_DIM), pred.shape

    ref = reference_forward(x, raw)
    assert jnp.allclose(pred, ref, atol=1e-4, rtol=1e-4), (
        float(jnp.max(jnp.abs(pred - ref))))

    print("KERNEL_OK")
</pallas_src>

<mosaic_0001>
module attributes {stable_mosaic.version = 11 : i64} {
  func.func @lstm_model_kernel(%arg0: i32, %arg1: memref<20x8x2xf32, #tpu.memory_space<vmem>>, %arg2: memref<2x256xf32, #tpu.memory_space<vmem>>, %arg3: memref<64x256xf32, #tpu.memory_space<vmem>>, %arg4: memref<1x256xf32, #tpu.memory_space<vmem>>, %arg5: memref<64x256xf32, #tpu.memory_space<vmem>>, %arg6: memref<1x256xf32, #tpu.memory_space<vmem>>, %arg7: memref<64x2xf32, #tpu.memory_space<vmem>>, %arg8: memref<1x2xf32, #tpu.memory_space<vmem>>, %arg9: memref<30x8x2xf32, #tpu.memory_space<vmem>>, %arg10: memref<20x8x256xf32, #tpu.memory_space<vmem>>, %arg11: memref<30x8x64xf32, #tpu.memory_space<vmem>>) attributes {dimension_semantics = [#tpu.dimension_semantics<parallel>], iteration_bounds = array<i64: 1>, scalar_prefetch = 0 : i64, scratch_operands = 2 : i64, tpu.core_type = #tpu.core_type<tc>, window_params = [{transform_indices = @transform_0, window_bounds = array<i64: 20, 8, 2>}, {pipeline_mode = #tpu.pipeline_mode<synchronous>, transform_indices = @transform_1, window_bounds = array<i64: 2, 256>}, {pipeline_mode = #tpu.pipeline_mode<synchronous>, transform_indices = @transform_2, window_bounds = array<i64: 64, 256>}, {pipeline_mode = #tpu.pipeline_mode<synchronous>, transform_indices = @transform_3, window_bounds = array<i64: 1, 256>}, {pipeline_mode = #tpu.pipeline_mode<synchronous>, transform_indices = @transform_4, window_bounds = array<i64: 64, 256>}, {pipeline_mode = #tpu.pipeline_mode<synchronous>, transform_indices = @transform_5, window_bounds = array<i64: 1, 256>}, {pipeline_mode = #tpu.pipeline_mode<synchronous>, transform_indices = @transform_6, window_bounds = array<i64: 64, 2>}, {pipeline_mode = #tpu.pipeline_mode<synchronous>, transform_indices = @transform_7, window_bounds = array<i64: 1, 2>}, {transform_indices = @transform_8, window_bounds = array<i64: 30, 8, 2>}]} {
    %c0 = arith.constant 0 : index
    %c0_0 = arith.constant 0 : index
    %c0_1 = arith.constant 0 : index
    %0 = vector.load %arg1[%c0, %c0_0, %c0_1] : memref<20x8x2xf32, #tpu.memory_space<vmem>>, vector<20x8x2xf32>
    %c0_2 = arith.constant 0 : index
    %c0_3 = arith.constant 0 : index
    %1 = vector.load %arg2[%c0_2, %c0_3] : memref<2x256xf32, #tpu.memory_space<vmem>>, vector<1x256xf32>
    %2 = vector.shape_cast %1 : vector<1x256xf32> to vector<1x1x256xf32>
    %c1 = arith.constant 1 : index
    %c0_4 = arith.constant 0 : index
    %3 = vector.load %arg2[%c1, %c0_4] : memref<2x256xf32, #tpu.memory_space<vmem>>, vector<1x256xf32>
    %4 = vector.shape_cast %3 : vector<1x256xf32> to vector<1x1x256xf32>
    %c0_5 = arith.constant 0 : index
    %c0_6 = arith.constant 0 : index
    %5 = vector.load %arg4[%c0_5, %c0_6] : memref<1x256xf32, #tpu.memory_space<vmem>>, vector<1x256xf32>
    %6 = vector.shape_cast %5 : vector<1x256xf32> to vector<1x1x256xf32>
    %7 = vector.extract_strided_slice %0 {offsets = [0, 0, 0], sizes = [20, 8, 1], strides = [1, 1, 1]} : vector<20x8x2xf32> to vector<20x8x1xf32>
    %8 = vector.broadcast %7 : vector<20x8x1xf32> to vector<20x8x256xf32>
    %9 = vector.broadcast %2 : vector<1x1x256xf32> to vector<20x8x256xf32>
    %10 = arith.mulf %8, %9 : vector<20x8x256xf32>
    %11 = vector.extract_strided_slice %0 {offsets = [0, 0, 1], sizes = [20, 8, 1], strides = [1, 1, 1]} : vector<20x8x2xf32> to vector<20x8x1xf32>
    %12 = vector.broadcast %11 : vector<20x8x1xf32> to vector<20x8x256xf32>
    %13 = vector.broadcast %4 : vector<1x1x256xf32> to vector<20x8x256xf32>
    %14 = arith.mulf %12, %13 : vector<20x8x256xf32>
    %15 = arith.addf %10, %14 : vector<20x8x256xf32>
    %16 = vector.broadcast %6 : vector<1x1x256xf32> to vector<20x8x256xf32>
    %17 = arith.addf %15, %16 : vector<20x8x256xf32>
    %c0_7 = arith.constant 0 : index
    %c0_8 = arith.constant 0 : index
    %c0_9 = arith.constant 0 : index
    %18 = vector.load %arg10[%c0_7, %c0_8, %c0_9] : memref<20x8x256xf32, #tpu.memory_space<vmem>>, vector<20x8x256xf32>
    tpu.vector_store %arg10[%c0_7, %c0_8, %c0_9], %17 {strides = array<i32>} : memref<20x8x256xf32, #tpu.memory_space<vmem>>, vector<20x8x256xf32>,
    %cst = arith.constant 0.000000e+00 : f32
    %19 = vector.broadcast %cst : f32 to vector<8x64xf32>
    %cst_10 = arith.constant 0.000000e+00 : f32
    %20 = vector.broadcast %cst_10 : f32 to vector<8x64xf32>
    %c0_11 = arith.constant 0 : index
    %c0_12 = arith.constant 0 : index
    %21 = vector.load %arg3[%c0_11, %c0_12] : memref<64x256xf32, #tpu.memory_space<vmem>>, vector<64x256xf32>
    %c0_i32 = arith.constant 0 : i32
    %c20_i32 = arith.constant 20 : i32
    %22 = arith.addi %c0_i32, %c20_i32 : i32
    %c1_i32 = arith.constant 1 : i32
    %23:2 = scf.for %arg12 = %c0_i32 to %22 step %c1_i32 iter_args(%arg13 = %19, %arg14 = %20) -> (vector<8x64xf32>, vector<8x64xf32>)  : i32 {
      %39 = arith.index_cast %arg12 : i32 to index
      %c0_32 = arith.constant 0 : index
      %c0_33 = arith.constant 0 : index
      %40 = vector.load %arg10[%39, %c0_32, %c0_33] : memref<20x8x256xf32, #tpu.memory_space<vmem>>, vector<1x8x256xf32>
      %41 = vector.shape_cast %40 : vector<1x8x256xf32> to vector<8x256xf32>
      %cst_34 = arith.constant dense<0.000000e+00> : vector<8x256xf32>
      %42 = tpu.matmul %arg13, %21, %cst_34 {dimension_numbers = #tpu.dot_dimension_numbers<[1], [0], [0], [1], [0, 0, 1, 1], [], []>} : vector<8x64xf32>, vector<64x256xf32>, vector<8x256xf32> -> vector<8x256xf32>
      %43 = arith.addf %41, %42 : vector<8x256xf32>
      %44 = vector.extract_strided_slice %43 {offsets = [0, 0], sizes = [8, 128], strides = [1, 1]} : vector<8x256xf32> to vector<8x128xf32>
      %45 = vector.extract_strided_slice %43 {offsets = [0, 128], sizes = [8, 128], strides = [1, 1]} : vector<8x256xf32> to vector<8x128xf32>
      %46 = arith.negf %44 : vector<8x128xf32>
      %47 = math.exp %46 : vector<8x128xf32>
      %cst_35 = arith.constant 1.000000e+00 : f32
      %48 = vector.broadcast %cst_35 : f32 to vector<8x128xf32>
      %49 = arith.addf %48, %47 : vector<8x128xf32>
      %50 = arith.divf %48, %49 : vector<8x128xf32>
      %51 = arith.negf %45 : vector<8x128xf32>
      %52 = math.exp %51 : vector<8x128xf32>
      %cst_36 = arith.constant 1.000000e+00 : f32
      %53 = vector.broadcast %cst_36 : f32 to vector<8x128xf32>
      %54 = arith.addf %53, %52 : vector<8x128xf32>
      %55 = arith.divf %53, %54 : vector<8x128xf32>
      %56 = math.tanh %45 : vector<8x128xf32>
      %57 = vector.extract_strided_slice %50 {offsets = [0, 0], sizes = [8, 64], strides = [1, 1]} : vector<8x128xf32> to vector<8x64xf32>
      %58 = vector.extract_strided_slice %50 {offsets = [0, 64], sizes = [8, 64], strides = [1, 1]} : vector<8x128xf32> to vector<8x64xf32>
      %59 = vector.extract_strided_slice %55 {offsets = [0, 0], sizes = [8, 64], strides = [1, 1]} : vector<8x128xf32> to vector<8x64xf32>
      %60 = vector.extract_strided_slice %56 {offsets = [0, 64], sizes = [8, 64], strides = [1, 1]} : vector<8x128xf32> to vector<8x64xf32>
      %61 = arith.mulf %58, %arg14 : vector<8x64xf32>
      %62 = arith.mulf %57, %60 : vector<8x64xf32>
      %63 = arith.addf %61, %62 : vector<8x64xf32>
      %64 = math.tanh %63 : vector<8x64xf32>
      %65 = arith.mulf %59, %64 : vector<8x64xf32>
      scf.yield %65, %63 : vector<8x64xf32>, vector<8x64xf32>
    }
    %c20_i32_13 = arith.constant 20 : i32
    %c0_14 = arith.constant 0 : index
    %c0_15 = arith.constant 0 : index
    %24 = vector.load %arg5[%c0_14, %c0_15] : memref<64x256xf32, #tpu.memory_space<vmem>>, vector<64x256xf32>
    %c0_16 = arith.constant 0 : index
    %c0_17 = arith.constant 0 : index
    %25 = vector.load %arg6[%c0_16, %c0_17] : memref<1x256xf32, #tpu.memory_space<vmem>>, vector<1x256xf32>
    %26 = vector.shape_cast %25 : vector<1x256xf32> to vector<1x256xf32>
    %27 = vector.broadcast %26 : vector<1x256xf32> to vector<8x256xf32>
    %c0_i32_18 = arith.constant 0 : i32
    %c30_i32 = arith.constant 30 : i32
    %28 = arith.addi %c0_i32_18, %c30_i32 : i32
    %c1_i32_19 = arith.constant 1 : i32
    %29:2 = scf.for %arg12 = %c0_i32_18 to %28 step %c1_i32_19 iter_args(%arg13 = %23#0, %arg14 = %23#1) -> (vector<8x64xf32>, vector<8x64xf32>)  : i32 {
      %cst_32 = arith.constant dense<0.000000e+00> : vector<8x256xf32>
      %39 = tpu.matmul %arg13, %24, %cst_32 {dimension_numbers = #tpu.dot_dimension_numbers<[1], [0], [0], [1], [0, 0, 1, 1], [], []>} : vector<8x64xf32>, vector<64x256xf32>, vector<8x256xf32> -> vector<8x256xf32>
      %40 = arith.addf %39, %27 : vector<8x256xf32>
      %41 = vector.extract_strided_slice %40 {offsets = [0, 0], sizes = [8, 128], strides = [1, 1]} : vector<8x256xf32> to vector<8x128xf32>
      %42 = vector.extract_strided_slice %40 {offsets = [0, 128], sizes = [8, 128], strides = [1, 1]} : vector<8x256xf32> to vector<8x128xf32>
      %43 = arith.negf %41 : vector<8x128xf32>
      %44 = math.exp %43 : vector<8x128xf32>
      %cst_33 = arith.constant 1.000000e+00 : f32
      %45 = vector.broadcast %cst_33 : f32 to vector<8x128xf32>
      %46 = arith.addf %45, %44 : vector<8x128xf32>
      %47 = arith.divf %45, %46 : vector<8x128xf32>
      %48 = arith.negf %42 : vector<8x128xf32>
      %49 = math.exp %48 : vector<8x128xf32>
      %cst_34 = arith.constant 1.000000e+00 : f32
      %50 = vector.broadcast %cst_34 : f32 to vector<8x128xf32>
      %51 = arith.addf %50, %49 : vector<8x128xf32>
      %52 = arith.divf %50, %51 : vector<8x128xf32>
      %53 = math.tanh %42 : vector<8x128xf32>
      %54 = vector.extract_strided_slice %47 {offsets = [0, 0], sizes = [8, 64], strides = [1, 1]} : vector<8x128xf32> to vector<8x64xf32>
      %55 = vector.extract_strided_slice %47 {offsets = [0, 64], sizes = [8, 64], strides = [1, 1]} : vector<8x128xf32> to vector<8x64xf32>
      %56 = vector.extract_strided_slice %52 {offsets = [0, 0], sizes = [8, 64], strides = [1, 1]} : vector<8x128xf32> to vector<8x64xf32>
      %57 = vector.extract_strided_slice %53 {offsets = [0, 64], sizes = [8, 64], strides = [1, 1]} : vector<8x128xf32> to vector<8x64xf32>
      %58 = arith.mulf %55, %arg14 : vector<8x64xf32>
      %59 = arith.mulf %54, %57 : vector<8x64xf32>
      %60 = arith.addf %58, %59 : vector<8x64xf32>
      %61 = math.tanh %60 : vector<8x64xf32>
      %62 = arith.mulf %56, %61 : vector<8x64xf32>
      %63 = arith.index_cast %arg12 : i32 to index
      %c0_35 = arith.constant 0 : index
      %c0_36 = arith.constant 0 : index
      %64 = vector.load %arg11[%63, %c0_35, %c0_36] : memref<30x8x64xf32, #tpu.memory_space<vmem>>, vector<1x8x64xf32>
      %65 = vector.shape_cast %64 : vector<1x8x64xf32> to vector<8x64xf32>
      %66 = vector.shape_cast %62 : vector<8x64xf32> to vector<1x8x64xf32>
      tpu.vector_store %arg11[%63, %c0_35, %c0_36], %66 {strides = array<i32>} : memref<30x8x64xf32, #tpu.memory_space<vmem>>, vector<1x8x64xf32>,
      scf.yield %62, %60 : vector<8x64xf32>, vector<8x64xf32>
    }
    %c30_i32_20 = arith.constant 30 : i32
    %c0_21 = arith.constant 0 : index
    %c0_22 = arith.constant 0 : index
    %c0_23 = arith.constant 0 : index
    %30 = vector.load %arg11[%c0_21, %c0_22, %c0_23] : memref<30x8x64xf32, #tpu.memory_space<vmem>>, vector<30x8x64xf32>
    %31 = vector.shape_cast %30 : vector<30x8x64xf32> to vector<240x64xf32>
    %c0_24 = arith.constant 0 : index
    %c0_25 = arith.constant 0 : index
    %32 = vector.load %arg7[%c0_24, %c0_25] : memref<64x2xf32, #tpu.memory_space<vmem>>, vector<64x2xf32>
    %cst_26 = arith.constant dense<0.000000e+00> : vector<240x2xf32>
    %33 = tpu.matmul %31, %32, %cst_26 {dimension_numbers = #tpu.dot_dimension_numbers<[1], [0], [0], [1], [0, 0, 1, 1], [], []>} : vector<240x64xf32>, vector<64x2xf32>, vector<240x2xf32> -> vector<240x2xf32>
    %c0_27 = arith.constant 0 : index
    %c0_28 = arith.constant 0 : index
    %34 = vector.load %arg8[%c0_27, %c0_28] : memref<1x2xf32, #tpu.memory_space<vmem>>, vector<1x2xf32>
    %35 = vector.broadcast %34 : vector<1x2xf32> to vector<240x2xf32>
    %36 = arith.addf %33, %35 : vector<240x2xf32>
    %37 = vector.shape_cast %36 : vector<240x2xf32> to vector<30x8x2xf32>
    %c0_29 = arith.constant 0 : index
    %c0_30 = arith.constant 0 : index
    %c0_31 = arith.constant 0 : index
    %38 = vector.load %arg9[%c0_29, %c0_30, %c0_31] : memref<30x8x2xf32, #tpu.memory_space<vmem>>, vector<30x8x2xf32>
    tpu.vector_store %arg9[%c0_29, %c0_30, %c0_31], %37 {strides = array<i32>} : memref<30x8x2xf32, #tpu.memory_space<vmem>>, vector<30x8x2xf32>,
    return
  }
  func.func @transform_0(%arg0: i32) -> (i32, i32, i32) {
    %c0_i32 = arith.constant 0 : i32
    %c0_i32_0 = arith.constant 0 : i32
    %c0_i32_1 = arith.constant 0 : i32
    return %c0_i32, %arg0, %c0_i32_0 : i32, i32, i32
  }
  func.func @transform_1(%arg0: i32) -> (i32, i32) {
    %c0_i32 = arith.constant 0 : i32
    %c0_i32_0 = arith.constant 0 : i32
    %c0_i32_1 = arith.constant 0 : i32
    return %c0_i32, %c0_i32_0 : i32, i32
  }
  func.func @transform_2(%arg0: i32) -> (i32, i32) {
    %c0_i32 = arith.constant 0 : i32
    %c0_i32_0 = arith.constant 0 : i32
    %c0_i32_1 = arith.constant 0 : i32
    return %c0_i32, %c0_i32_0 : i32, i32
  }
  func.func @transform_3(%arg0: i32) -> (i32, i32) {
    %c0_i32 = arith.constant 0 : i32
    %c0_i32_0 = arith.constant 0 : i32
    %c0_i32_1 = arith.constant 0 : i32
    return %c0_i32, %c0_i32_0 : i32, i32
  }
  func.func @transform_4(%arg0: i32) -> (i32, i32) {
    %c0_i32 = arith.constant 0 : i32
    %c0_i32_0 = arith.constant 0 : i32
    %c0_i32_1 = arith.constant 0 : i32
    return %c0_i32, %c0_i32_0 : i32, i32
  }
  func.func @transform_5(%arg0: i32) -> (i32, i32) {
    %c0_i32 = arith.constant 0 : i32
    %c0_i32_0 = arith.constant 0 : i32
    %c0_i32_1 = arith.constant 0 : i32
    return %c0_i32, %c0_i32_0 : i32, i32
  }
  func.func @transform_6(%arg0: i32) -> (i32, i32) {
    %c0_i32 = arith.constant 0 : i32
    %c0_i32_0 = arith.constant 0 : i32
    %c0_i32_1 = arith.constant 0 : i32
    return %c0_i32, %c0_i32_0 : i32, i32
  }
  func.func @transform_7(%arg0: i32) -> (i32, i32) {
    %c0_i32 = arith.constant 0 : i32
    %c0_i32_0 = arith.constant 0 : i32
    %c0_i32_1 = arith.constant 0 : i32
    return %c0_i32, %c0_i32_0 : i32, i32
  }
  func.func @transform_8(%arg0: i32) -> (i32, i32, i32) {
    %c0_i32 = arith.constant 0 : i32
    %c0_i32_0 = arith.constant 0 : i32
    %c0_i32_1 = arith.constant 0 : i32
    return %c0_i32, %arg0, %c0_i32_0 : i32, i32, i32
  }
}

</mosaic_0001>

<bundles_post_ra>
// kernel: tpu_custom_call.1
= control target key start
LH: loop header
LB: loop body
LE: loop exit
PB: predicated region body
PF: predicated region fallthrough
CT: control target
= control target key end

     0   :  { %13 = vsyncpa [#allocation5], 0  ;;  %s1485_s27 = smov [#allocation4]   ;;  %s2218_s0 = inlined_call_operand.vmem [shape: f32[20,8,2], index: 0, kind: input, shape index: {}]   ;;  %s2219_s1 = inlined_call_operand.vmem [shape: f32[2,256], index: 1, kind: input, shape index: {}]   ;;  %s2220_s2 = inlined_call_operand.vmem [shape: f32[64,256], index: 2, kind: input, shape index: {}]   ;;  %s2221_s3 = inlined_call_operand.vmem [shape: f32[1,256], index: 3, kind: input, shape index: {}]   ;;  %s2222_s4 = inlined_call_operand.hbm [shape: f32[64,256], index: 4, kind: input, shape index: {}]   ;;  %s2223_s5 = inlined_call_operand.vmem [shape: f32[1,256], index: 5, kind: input, shape index: {}]   ;;  %s2224_s6 = inlined_call_operand.vmem [shape: f32[64,2], index: 6, kind: input, shape index: {}]   ;;  %s2225_s7 = inlined_call_operand.vmem [shape: f32[1,2], index: 7, kind: input, shape index: {}]   ;;  %s2226_s8 = inlined_call_operand.vmem [shape: f32[30,8,2], index: 8, kind: output, shape index: {}]  }
   0x1   :  { %s27_s28 = sshll.u32 %s1485_s27, 4  ;;  %s28_s28 = int_to_ptr.vmem [resolvable:$true] %s27_s28 }
   0x2   :  { %s1423_s29 = scalar_lea.vmem %s28_s28, 2048  ;;  %p1428_p1 = scmp.lt.s32.totalorder %s28_s28, %s28_s28 }
   0x3   :  { %p1424_p0 = scmp.ne.s32.totalorder %s28_s28, %s1423_s29  ;;  %p1429_p2 = scmp.lt.s32.totalorder %s1423_s29, %s1423_s29 }
   0x5   :  { %p1430_p3 = por %p1429_p2, %p1428_p1 }
   0x7   :  { %p1431_p4 = pnand %p1430_p3, %p1424_p0 }
   0x9   :  { %1434 = shalt.err (!%p1431_p4)
}
   0xa   :  { %s1486_s30 = smov 256   ;;  %s1487_s9 = smov 16  }
   0xb   :  { %33 = dma.hbm_to_vmem [thread:$0]  %s2222_s4, 2048, %s28_s28, [#allocation5], %s1486_s30, %s1486_s30, %s1487_s9  }
   0xc   :  { %1459 = dma.done.wait [#allocation5], 2048  }
   0xd   :  { %1460 = vsyncadd [#allocation5], 4294965248  ;;  %v1488_v0 = vmov 0   ;;  %v1545_v1 = vld [vmem:[%s2220_s2] sm:$0xff]  ;;  %v1550_v2 = vld [vmem:[%s2220_s2 + $0x8] sm:$0xff]  ;;  %v1489_v37 = vmov 1   ;;  %v168_v52 = vlaneseq }
   0xe   :  { %1388 = vset.pattern.permute.xlu1 %v1488_v0  ;;  %1387 = vset.pattern.permute.xlu0 %v1488_v0  ;;  %v1555_v3 = vld [vmem:[%s2220_s2 + $0x10] sm:$0xff]  ;;  %v1560_v4 = vld [vmem:[%s2220_s2 + $0x18] sm:$0xff]  ;;  %v1565_v5 = vld [vmem:[%s2220_s2 + $0x20] sm:$0xff] }
   0xf   :  { %v1570_v6 = vld [vmem:[%s2220_s2 + $0x28] sm:$0xff]  ;;  %v1575_v7 = vld [vmem:[%s2220_s2 + $0x30] sm:$0xff]  ;;  %v1580_v8 = vld [vmem:[%s2220_s2 + $0x38] sm:$0xff]  ;;  %v169_v55 = vshrl.u32 %v168_v52, 7 }
  0x10   :  { %v1585_v9 = vld [vmem:[%s2220_s2 + $0x40] sm:$0xff]  ;;  %v1590_v10 = vld [vmem:[%s2220_s2 + $0x48] sm:$0xff]  ;;  %v1595_v11 = vld [vmem:[%s2220_s2 + $0x50] sm:$0xff] }
  0x11   :  { %v1600_v12 = vld [vmem:[%s2220_s2 + $0x58] sm:$0xff]  ;;  %v1605_v13 = vld [vmem:[%s2220_s2 + $0x60] sm:$0xff]  ;;  %v1610_v14 = vld [vmem:[%s2220_s2 + $0x68] sm:$0xff]  ;;  %v1706_v58 = vsub.s32 0, %v169_v55  ;;  %v1708_v59 = vsub.s32 1, %v169_v55 }
  0x12   :  { %v1615_v15 = vld [vmem:[%s2220_s2 + $0x70] sm:$0xff]  ;;  %v1620_v16 = vld [vmem:[%s2220_s2 + $0x78] sm:$0xff]  ;;  %v43_v18 = vld [vmem:[%s2218_s0] sm:$0xff] }
  0x13   :  { %v45_v17 = vld [vmem:[%s2218_s0 + $0x10] sm:$0xff]  ;;  %69 = vperm.xlu0 %1387, %v43_v18   ;;  %v46_v19 = vld [vmem:[%s2218_s0 + $0x18] sm:$0xff]  ;;  %v44_v20 = vld [vmem:[%s2218_s0 + $0x8] sm:$0xff]  ;;  %2228 = vst [vmem:[#allocation7_spill] sm:$0xff] %v1708_v59 }
  0x14   :  { %79 = vperm.xlu1 %1388, %v45_v17   ;;  %v48_v21 = vld [vmem:[%s2218_s0 + $0x28] sm:$0xff]  ;;  %v47_v22 = vld [vmem:[%s2218_s0 + $0x20] sm:$0xff]  ;;  %v50_v23 = vld [vmem:[%s2218_s0 + $0x38] sm:$0xff] }
  0x15   :  { %v49_v24 = vld [vmem:[%s2218_s0 + $0x30] sm:$0xff]  ;;  %v52_v25 = vld [vmem:[%s2218_s0 + $0x48] sm:$0xff]  ;;  %v51_v26 = vld [vmem:[%s2218_s0 + $0x40] sm:$0xff] }
  0x16   :  { %v54_v27 = vld [vmem:[%s2218_s0 + $0x58] sm:$0xff]  ;;  %v53_v28 = vld [vmem:[%s2218_s0 + $0x50] sm:$0xff]  ;;  %v56_v29 = vld [vmem:[%s2218_s0 + $0x68] sm:$0xff] }
  0x17   :  { %74 = vperm.xlu0 %1387, %v44_v20   ;;  %v55_v30 = vld [vmem:[%s2218_s0 + $0x60] sm:$0xff]  ;;  %v58_v31 = vld [vmem:[%s2218_s0 + $0x78] sm:$0xff]  ;;  %v57_v32 = vld [vmem:[%s2218_s0 + $0x70] sm:$0xff] }
  0x18   :  { %84 = vperm.xlu1 %1388, %v46_v19   ;;  %v60_v33 = vld [vmem:[%s2218_s0 + $0x88] sm:$0xff]  ;;  %v59_v34 = vld [vmem:[%s2218_s0 + $0x80] sm:$0xff]  ;;  %v62_v35 = vld [vmem:[%s2218_s0 + $0x98] sm:$0xff] }
  0x19   :  { %v61_v36 = vld [vmem:[%s2218_s0 + $0x90] sm:$0xff]  ;;  %v63_v60 = vld [vmem:[%s2219_s1] ss:$2 sm:$0x3] }
  0x1a   :  { %v1173_v61 = vld [vmem:[%s2219_s1 + $0x1] ss:$2 sm:$0x3]  ;;  %v1721_v0 = vrot.slane %v63_v60, %v1706_v58  ;;  %s1893_s1 = smov 0  }
  0x1b   :  { %89 = vperm.xlu0 %1387, %v47_v22  }
  0x1c   :  { %94 = vperm.xlu1 %1388, %v48_v21  }
  0x1f   :  { %99 = vperm.xlu0 %1387, %v49_v24  }
  0x20   :  { %104 = vperm.xlu1 %1388, %v50_v23  }
  0x23   :  { %109 = vperm.xlu0 %1387, %v51_v26  }
  0x24   :  { %114 = vperm.xlu1 %1388, %v52_v25  }
  0x27   :  { %119 = vperm.xlu0 %1387, %v53_v28  }
  0x28   :  { %124 = vperm.xlu1 %1388, %v54_v27  }
  0x2b   :  { %129 = vperm.xlu0 %1387, %v55_v30  }
  0x2c   :  { %134 = vperm.xlu1 %1388, %v56_v29  }
  0x2f   :  { %139 = vperm.xlu0 %1387, %v57_v32  }
  0x30   :  { %144 = vperm.xlu1 %1388, %v58_v31  }
  0x33   :  { %149 = vperm.xlu0 %1387, %v59_v34  }
  0x34   :  { %154 = vperm.xlu1 %1388, %v60_v33  }
  0x37   :  { %159 = vperm.xlu0 %1387, %v61_v36  }
  0x38   :  { %164 = vperm.xlu1 %1388, %v62_v35  }
  0x3b   :  { %1389 = vset.pattern.permute.xlu0 %v1489_v37 }
  0x3c   :  { %1390 = vset.pattern.permute.xlu1 %v1489_v37  ;;  %219 = vperm.xlu0 %1389, %v43_v18   ;;  %v66_v18 = vld [vmem:[%s2221_s3] sm:$0x3] }
  0x3d   :  { %223 = vperm.xlu1 %1390, %v44_v20   ;;  %v1733_v20 = vrot.slane %v1173_v61, %v1708_v59 }
  0x40   :  { %231 = vperm.xlu0 %1389, %v46_v19   ;;  %v1730_v19 = vrot.slane %v1173_v61, %v1706_v58 }
  0x41   :  { %227 = vperm.xlu1 %1390, %v45_v17   ;;  %v1724_v17 = vrot.slane %v63_v60, %v1708_v59 }
  0x44   :  { %239 = vperm.xlu0 %1389, %v48_v21   ;;  %v1736_v21 = vrot.slane %v66_v18, %v1706_v58 }
  0x45   :  { %235 = vperm.xlu1 %1390, %v47_v22   ;;  %v1739_v22 = vrot.slane %v66_v18, %v1708_v59 }
  0x48   :  { %247 = vperm.xlu0 %1389, %v50_v23  }
  0x49   :  { %243 = vperm.xlu1 %1390, %v49_v24  }
  0x4c   :  { %255 = vperm.xlu0 %1389, %v52_v25  }
  0x4d   :  { %251 = vperm.xlu1 %1390, %v51_v26  }
  0x50   :  { %263 = vperm.xlu0 %1389, %v54_v27  }
  0x51   :  { %259 = vperm.xlu1 %1390, %v53_v28  }
  0x54   :  { %271 = vperm.xlu0 %1389, %v56_v29  }
  0x55   :  { %267 = vperm.xlu1 %1390, %v55_v30  }
  0x58   :  { %279 = vperm.xlu0 %1389, %v58_v31  }
  0x59   :  { %275 = vperm.xlu1 %1390, %v57_v32  }
  0x5c   :  { %287 = vperm.xlu0 %1389, %v60_v33  }
  0x5d   :  { %283 = vperm.xlu1 %1390, %v59_v34  }
  0x60   :  { %295 = vperm.xlu0 %1389, %v62_v35  }
  0x61   :  { %291 = vperm.xlu1 %1390, %v61_v36  }
  0x8e   :  { %v70_v39 = vpop.permute.xlu0 %69 }
  0x8f   :  { %v80_v38 = vpop.permute.xlu1 %79  ;;  %v178_v23 = vmul.f32 %v1721_v0, %v70_v39  ;;  %v179_v24 = vmul.f32 %v1724_v17, %v70_v39 }
  0x90   :  { %v182_v37 = vmul.f32 %v1721_v0, %v80_v38  ;;  %v183_v39 = vmul.f32 %v1724_v17, %v80_v38 }
  0x92   :  { %v75_v41 = vpop.permute.xlu0 %74 }
  0x93   :  { %v85_v40 = vpop.permute.xlu1 %84  ;;  %v180_v25 = vmul.f32 %v1721_v0, %v75_v41  ;;  %v181_v26 = vmul.f32 %v1724_v17, %v75_v41 }
  0x94   :  { %v184_v41 = vmul.f32 %v1721_v0, %v85_v40  ;;  %v185_v52 = vmul.f32 %v1724_v17, %v85_v40 }
  0x96   :  { %v90_v43 = vpop.permute.xlu0 %89 }
  0x97   :  { %v95_v42 = vpop.permute.xlu1 %94 }
  0x98   :  { %v188_v40 = vmul.f32 %v1721_v0, %v95_v42 }
  0x9a   :  { %v1684_v45 = vpop.permute.xlu0 %99 }
  0x9b   :  { %v1682_v44 = vpop.permute.xlu1 %104 }
  0x9e   :  { %v1688_v47 = vpop.permute.xlu0 %109 }
  0x9f   :  { %v1686_v46 = vpop.permute.xlu1 %114 }
  0xa2   :  { %v1692_v49 = vpop.permute.xlu0 %119 }
  0xa3   :  { %v1690_v48 = vpop.permute.xlu1 %124 }
  0xa6   :  { %v1696_v51 = vpop.permute.xlu0 %129 }
  0xa7   :  { %v1694_v50 = vpop.permute.xlu1 %134 }
  0xaa   :  { %v1700_v54 = vpop.permute.xlu0 %139 }
  0xab   :  { %v1698_v53 = vpop.permute.xlu1 %144 }
  0xae   :  { %v1704_v57 = vpop.permute.xlu0 %149 }
  0xaf   :  { %v1702_v56 = vpop.permute.xlu1 %154 }
  0xb2   :  { %v1718_v63 = vpop.permute.xlu0 %159 }
  0xb3   :  { %v1716_v62 = vpop.permute.xlu1 %164 }
  0xb7   :  { %v220_v28 = vpop.permute.xlu0 %219 }
  0xb8   :  { %v224_v27 = vpop.permute.xlu1 %223  ;;  %v309_v31 = vmul.f32 %v1730_v19, %v220_v28  ;;  %v310_v32 = vmul.f32 %v1733_v20, %v220_v28  ;;  %v189_v28 = vmul.f32 %v1724_v17, %v95_v42 }
  0xb9   :  { %v311_v29 = vmul.f32 %v1730_v19, %v224_v27  ;;  %v312_v30 = vmul.f32 %v1733_v20, %v224_v27 }
  0xba   :  { %v349_v35 = vadd.f32 %v309_v31, %v178_v23  ;;  %v350_v36 = vadd.f32 %v310_v32, %v179_v24 }
  0xbb   :  { %v351_v33 = vadd.f32 %v311_v29, %v180_v25  ;;  %v352_v34 = vadd.f32 %v312_v30, %v181_v26  ;;  %v232_v60 = vpop.permute.xlu0 %231  ;;  %v186_v29 = vmul.f32 %v1721_v0, %v90_v43  ;;  %v187_v30 = vmul.f32 %v1724_v17, %v90_v43 }
  0xbc   :  { %v228_v55 = vpop.permute.xlu1 %227  ;;  %v400_v27 = vadd.f32 %v1736_v21, %v349_v35  ;;  %v401_v25 = vadd.f32 %v1739_v22, %v350_v36  ;;  %v315_v38 = vmul.f32 %v1730_v19, %v232_v60  ;;  %v316_v26 = vmul.f32 %v1733_v20, %v232_v60 }
  0xbd   :  { %v402_v61 = vadd.f32 %v1736_v21, %v351_v33  ;;  %v403_v18 = vadd.f32 %v1739_v22, %v352_v34  ;;  %v313_v23 = vmul.f32 %v1730_v19, %v228_v55  ;;  %v314_v24 = vmul.f32 %v1733_v20, %v228_v55 }
  0xbe   :  { %440 = vst [vmem:[#allocation2] sm:$0xff] %v400_v27  ;;  %441 = vst [vmem:[#allocation2 + $0x8] sm:$0xff] %v401_v25  ;;  %v355_v33 = vadd.f32 %v315_v38, %v184_v41  ;;  %v356_v34 = vadd.f32 %v316_v26, %v185_v52  ;;  %v192_v25 = vmul.f32 %v1721_v0, %v1682_v44 }
  0xbf   :  { %442 = vst [vmem:[#allocation2 + $0x10] sm:$0xff] %v402_v61  ;;  %443 = vst [vmem:[#allocation2 + $0x18] sm:$0xff] %v403_v18  ;;  %v353_v31 = vadd.f32 %v313_v23, %v182_v37  ;;  %v354_v32 = vadd.f32 %v314_v24, %v183_v39  ;;  %v240_v36 = vpop.permute.xlu0 %239  ;;  %v193_v23 = vmul.f32 %v1724_v17, %v1682_v44 }
  0xc0   :  { %v236_v35 = vpop.permute.xlu1 %235  ;;  %v319_v42 = vmul.f32 %v1730_v19, %v240_v36  ;;  %v320_v59 = vmul.f32 %v1733_v20, %v240_v36  ;;  %v406_v18 = vadd.f32 %v1736_v21, %v355_v33  ;;  %v407_v37 = vadd.f32 %v1739_v22, %v356_v34 }
  0xc1   :  { %v317_v55 = vmul.f32 %v1730_v19, %v236_v35  ;;  %v318_v60 = vmul.f32 %v1733_v20, %v236_v35  ;;  %v404_v43 = vadd.f32 %v1736_v21, %v353_v31  ;;  %v405_v61 = vadd.f32 %v1739_v22, %v354_v32 }
  0xc2   :  { %v359_v52 = vadd.f32 %v319_v42, %v188_v40  ;;  %v360_v27 = vadd.f32 %v320_v59, %v189_v28  ;;  %v190_v24 = vmul.f32 %v1721_v0, %v1684_v45  ;;  %v191_v38 = vmul.f32 %v1724_v17, %v1684_v45  ;;  %446 = vst [vmem:[#allocation2 + $0x30] sm:$0xff] %v406_v18 }
  0xc3   :  { %v357_v39 = vadd.f32 %v317_v55, %v186_v29  ;;  %v358_v41 = vadd.f32 %v318_v60, %v187_v30  ;;  %444 = vst [vmem:[#allocation2 + $0x20] sm:$0xff] %v404_v43  ;;  %445 = vst [vmem:[#allocation2 + $0x28] sm:$0xff] %v405_v61  ;;  %v248_v29 = vpop.permute.xlu0 %247  ;;  %v196_v33 = vmul.f32 %v1721_v0, %v1686_v46 }
  0xc4   :  { %447 = vst [vmem:[#allocation2 + $0x38] sm:$0xff] %v407_v37  ;;  %v244_v26 = vpop.permute.xlu1 %243  ;;  %v410_v28 = vadd.f32 %v1736_v21, %v359_v52  ;;  %v411_v44 = vadd.f32 %v1739_v22, %v360_v27  ;;  %v323_v45 = vmul.f32 %v1730_v19, %v248_v29  ;;  %v324_v32 = vmul.f32 %v1733_v20, %v248_v29 }
  0xc5   :  { %v408_v59 = vadd.f32 %v1736_v21, %v357_v39  ;;  %v409_v40 = vadd.f32 %v1739_v22, %v358_v41  ;;  %v321_v30 = vmul.f32 %v1730_v19, %v244_v26  ;;  %v322_v31 = vmul.f32 %v1733_v20, %v244_v26 }
  0xc6   :  { %v197_v34 = vmul.f32 %v1724_v17, %v1686_v46  ;;  %v194_v35 = vmul.f32 %v1721_v0, %v1688_v47  ;;  %v195_v36 = vmul.f32 %v1724_v17, %v1688_v47  ;;  %450 = vst [vmem:[#allocation2 + $0x50] sm:$0xff] %v410_v28  ;;  %451 = vst [vmem:[#allocation2 + $0x58] sm:$0xff] %v411_v44 }
  0xc7   :  { %448 = vst [vmem:[#allocation2 + $0x40] sm:$0xff] %v408_v59  ;;  %449 = vst [vmem:[#allocation2 + $0x48] sm:$0xff] %v409_v40  ;;  %v361_v55 = vadd.f32 %v321_v30, %v190_v24  ;;  %v362_v60 = vadd.f32 %v322_v31, %v191_v38  ;;  %v363_v42 = vadd.f32 %v323_v45, %v192_v25  ;;  %v256_v18 = vpop.permute.xlu0 %255 }
  0xc8   :  { %v364_v43 = vadd.f32 %v324_v32, %v193_v23  ;;  %v252_v61 = vpop.permute.xlu1 %251  ;;  %v327_v39 = vmul.f32 %v1730_v19, %v256_v18  ;;  %v328_v41 = vmul.f32 %v1733_v20, %v256_v18  ;;  %v200_v29 = vmul.f32 %v1721_v0, %v1690_v48 }
  0xc9   :  { %v325_v37 = vmul.f32 %v1730_v19, %v252_v61  ;;  %v326_v46 = vmul.f32 %v1733_v20, %v252_v61  ;;  %v412_v47 = vadd.f32 %v1736_v21, %v361_v55  ;;  %v413_v52 = vadd.f32 %v1739_v22, %v362_v60 }
  0xca   :  { %v414_v27 = vadd.f32 %v1736_v21, %v363_v42  ;;  %v415_v24 = vadd.f32 %v1739_v22, %v364_v43  ;;  %v367_v38 = vadd.f32 %v327_v39, %v196_v33  ;;  %v368_v26 = vadd.f32 %v328_v41, %v197_v34 }
  0xcb   :  { %v365_v25 = vadd.f32 %v325_v37, %v194_v35  ;;  %v366_v23 = vadd.f32 %v326_v46, %v195_v36  ;;  %v201_v59 = vmul.f32 %v1724_v17, %v1690_v48  ;;  %v198_v40 = vmul.f32 %v1721_v0, %v1692_v49  ;;  %452 = vst [vmem:[#allocation2 + $0x60] sm:$0xff] %v412_v47  ;;  %v264_v30 = vpop.permute.xlu0 %263 }
  0xcc   :  { %v199_v28 = vmul.f32 %v1724_v17, %v1692_v49  ;;  %453 = vst [vmem:[#allocation2 + $0x68] sm:$0xff] %v413_v52  ;;  %454 = vst [vmem:[#allocation2 + $0x70] sm:$0xff] %v414_v27  ;;  %v260_v44 = vpop.permute.xlu1 %259  ;;  %v418_v32 = vadd.f32 %v1736_v21, %v367_v38  ;;  %v419_v48 = vadd.f32 %v1739_v22, %v368_v26 }
  0xcd   :  { %455 = vst [vmem:[#allocation2 + $0x78] sm:$0xff] %v415_v24  ;;  %v416_v31 = vadd.f32 %v1736_v21, %v365_v25  ;;  %v417_v45 = vadd.f32 %v1739_v22, %v366_v23  ;;  %v329_v33 = vmul.f32 %v1730_v19, %v260_v44  ;;  %v330_v34 = vmul.f32 %v1733_v20, %v260_v44 }
  0xce   :  { %v331_v49 = vmul.f32 %v1730_v19, %v264_v30  ;;  %v332_v35 = vmul.f32 %v1733_v20, %v264_v30  ;;  %v204_v36 = vmul.f32 %v1721_v0, %v1694_v50  ;;  %v205_v55 = vmul.f32 %v1724_v17, %v1694_v50  ;;  %458 = vst [vmem:[#allocation2 + $0x90] sm:$0xff] %v418_v32 }
  0xcf   :  { %v202_v60 = vmul.f32 %v1721_v0, %v1696_v51  ;;  %v203_v42 = vmul.f32 %v1724_v17, %v1696_v51  ;;  %456 = vst [vmem:[#allocation2 + $0x80] sm:$0xff] %v416_v31  ;;  %457 = vst [vmem:[#allocation2 + $0x88] sm:$0xff] %v417_v45  ;;  %v369_v43 = vadd.f32 %v329_v33, %v198_v40  ;;  %v272_v39 = vpop.permute.xlu0 %271 }
  0xd0   :  { %459 = vst [vmem:[#allocation2 + $0x98] sm:$0xff] %v419_v48  ;;  %v370_v61 = vadd.f32 %v330_v34, %v199_v28  ;;  %v371_v18 = vadd.f32 %v331_v49, %v200_v29  ;;  %v372_v37 = vadd.f32 %v332_v35, %v201_v59  ;;  %v268_v46 = vpop.permute.xlu1 %267  ;;  %v335_v47 = vmul.f32 %v1730_v19, %v272_v39 }
  0xd1   :  { %v333_v41 = vmul.f32 %v1730_v19, %v268_v46  ;;  %v334_v50 = vmul.f32 %v1733_v20, %v268_v46  ;;  %v336_v52 = vmul.f32 %v1733_v20, %v272_v39  ;;  %v420_v51 = vadd.f32 %v1736_v21, %v369_v43 }
  0xd2   :  { %v421_v27 = vadd.f32 %v1739_v22, %v370_v61  ;;  %v422_v24 = vadd.f32 %v1736_v21, %v371_v18  ;;  %v423_v25 = vadd.f32 %v1739_v22, %v372_v37  ;;  %v375_v26 = vadd.f32 %v335_v47, %v204_v36 }
  0xd3   :  { %v373_v23 = vadd.f32 %v333_v41, %v202_v60  ;;  %v374_v38 = vadd.f32 %v334_v50, %v203_v42  ;;  %v376_v29 = vadd.f32 %v336_v52, %v205_v55  ;;  %v208_v59 = vmul.f32 %v1721_v0, %v1698_v53  ;;  %460 = vst [vmem:[#allocation2 + $0xa0] sm:$0xff] %v420_v51  ;;  %v280_v31 = vpop.permute.xlu0 %279 }
  0xd4   :  { %v209_v40 = vmul.f32 %v1724_v17, %v1698_v53  ;;  %v206_v28 = vmul.f32 %v1721_v0, %v1700_v54  ;;  %v207_v44 = vmul.f32 %v1724_v17, %v1700_v54  ;;  %461 = vst [vmem:[#allocation2 + $0xa8] sm:$0xff] %v421_v27  ;;  %462 = vst [vmem:[#allocation2 + $0xb0] sm:$0xff] %v422_v24  ;;  %v276_v30 = vpop.permute.xlu1 %275 }
  0xd5   :  { %463 = vst [vmem:[#allocation2 + $0xb8] sm:$0xff] %v423_v25  ;;  %v424_v45 = vadd.f32 %v1736_v21, %v373_v23  ;;  %v425_v32 = vadd.f32 %v1739_v22, %v374_v38  ;;  %v426_v48 = vadd.f32 %v1736_v21, %v375_v26  ;;  %v427_v53 = vadd.f32 %v1739_v22, %v376_v29 }
  0xd6   :  { %v337_v33 = vmul.f32 %v1730_v19, %v276_v30  ;;  %v338_v34 = vmul.f32 %v1733_v20, %v276_v30  ;;  %v339_v54 = vmul.f32 %v1730_v19, %v280_v31  ;;  %v340_v49 = vmul.f32 %v1733_v20, %v280_v31 }
  0xd7   :  { %v212_v35 = vmul.f32 %v1721_v0, %v1702_v56  ;;  %v213_v36 = vmul.f32 %v1724_v17, %v1702_v56  ;;  %v210_v55 = vmul.f32 %v1721_v0, %v1704_v57  ;;  %v211_v60 = vmul.f32 %v1724_v17, %v1704_v57  ;;  %464 = vst [vmem:[#allocation2 + $0xc0] sm:$0xff] %v424_v45  ;;  %v288_v46 = vpop.permute.xlu0 %287 }
  0xd8   :  { %465 = vst [vmem:[#allocation2 + $0xc8] sm:$0xff] %v425_v32  ;;  %466 = vst [vmem:[#allocation2 + $0xd0] sm:$0xff] %v426_v48  ;;  %v377_v42 = vadd.f32 %v337_v33, %v206_v28  ;;  %v378_v43 = vadd.f32 %v338_v34, %v207_v44  ;;  %v379_v61 = vadd.f32 %v339_v54, %v208_v59  ;;  %v284_v37 = vpop.permute.xlu1 %283 }
  0xd9   :  { %467 = vst [vmem:[#allocation2 + $0xd8] sm:$0xff] %v427_v53  ;;  %v380_v18 = vadd.f32 %v340_v49, %v209_v40  ;;  %v341_v39 = vmul.f32 %v1730_v19, %v284_v37  ;;  %v342_v56 = vmul.f32 %v1733_v20, %v284_v37  ;;  %v343_v41 = vmul.f32 %v1730_v19, %v288_v46 }
  0xda   :  { %v344_v50 = vmul.f32 %v1733_v20, %v288_v46  ;;  %v428_v57 = vadd.f32 %v1736_v21, %v377_v42  ;;  %v429_v47 = vadd.f32 %v1739_v22, %v378_v43  ;;  %v430_v52 = vadd.f32 %v1736_v21, %v379_v61 }
  0xdb   :  { %v431_v51 = vadd.f32 %v1739_v22, %v380_v18  ;;  %v381_v27 = vadd.f32 %v341_v39, %v210_v55  ;;  %v382_v24 = vadd.f32 %v342_v56, %v211_v60  ;;  %v383_v25 = vadd.f32 %v343_v41, %v212_v35  ;;  %v296_v28 = vpop.permute.xlu0 %295 }
  0xdc   :  { %v384_v23 = vadd.f32 %v344_v50, %v213_v36  ;;  %v216_v38 = vmul.f32 %v1721_v0, %v1716_v62  ;;  %v217_v26 = vmul.f32 %v1724_v17, %v1716_v62  ;;  %v214_v29 = vmul.f32 %v1721_v0, %v1718_v63  ;;  %468 = vst [vmem:[#allocation2 + $0xe0] sm:$0xff] %v428_v57  ;;  %v292_v40 = vpop.permute.xlu1 %291 }
  0xdd   :  { %v215_v59 = vmul.f32 %v1724_v17, %v1718_v63  ;;  %469 = vst [vmem:[#allocation2 + $0xe8] sm:$0xff] %v429_v47  ;;  %470 = vst [vmem:[#allocation2 + $0xf0] sm:$0xff] %v430_v52  ;;  %v432_v44 = vadd.f32 %v1736_v21, %v381_v27  ;;  %v433_v30 = vadd.f32 %v1739_v22, %v382_v24 }
  0xde   :  { %471 = vst [vmem:[#allocation2 + $0xf8] sm:$0xff] %v431_v51  ;;  %v434_v31 = vadd.f32 %v1736_v21, %v383_v25  ;;  %v435_v62 = vadd.f32 %v1739_v22, %v384_v23  ;;  %v345_v45 = vmul.f32 %v1730_v19, %v292_v40  ;;  %v346_v0 = vmul.f32 %v1733_v20, %v292_v40 }
  0xdf   :  { %v347_v63 = vmul.f32 %v1730_v19, %v296_v28  ;;  %v348_v17 = vmul.f32 %v1733_v20, %v296_v28  ;;  %472 = vst [vmem:[#allocation2 + $0x100] sm:$0xff] %v432_v44  ;;  %473 = vst [vmem:[#allocation2 + $0x108] sm:$0xff] %v433_v30  ;;  %v1889_v19 = vmov 0.0   ;;  %v1891_v20 = vmov 0.0  }
  0xe0   :  { %474 = vst [vmem:[#allocation2 + $0x110] sm:$0xff] %v434_v31  ;;  %475 = vst [vmem:[#allocation2 + $0x118] sm:$0xff] %v435_v62  ;;  %v385_v32 = vadd.f32 %v345_v45, %v214_v29  ;;  %v386_v48 = vadd.f32 %v346_v0, %v215_v59 }
  0xe1   :  { %v387_v53 = vadd.f32 %v347_v63, %v216_v38  ;;  %v388_v33 = vadd.f32 %v348_v17, %v217_v26 }
  0xe2   :  { %v436_v34 = vadd.f32 %v1736_v21, %v385_v32  ;;  %v437_v54 = vadd.f32 %v1739_v22, %v386_v48 }
  0xe3   :  { %v438_v49 = vadd.f32 %v1736_v21, %v387_v53  ;;  %v439_v35 = vadd.f32 %v1739_v22, %v388_v33 }
  0xe4   :  { %476 = vst [vmem:[#allocation2 + $0x120] sm:$0xff] %v436_v34  ;;  %477 = vst [vmem:[#allocation2 + $0x128] sm:$0xff] %v437_v54 }
  0xe5   :  { %478 = vst [vmem:[#allocation2 + $0x130] sm:$0xff] %v438_v49  ;;  %479 = vst [vmem:[#allocation2 + $0x138] sm:$0xff] %v439_v35 }
  0xe6 LB: > { %529 = vmatprep.subr.mxu0 %v1620_v16  ;;  %v1490_v21 = vmov 0.0   ;;  %vm509_vm0 = vcmask 523264   ;;  %s1214_s3 = sshll.u32 %s1471_s1, 4  ;;  %s1491_s18 = smov 64   ;;  %s1471_s1 = sphi %s1893_s1, %s501_s1   ;;  %v1467_v20 = vphi %v1891_v20, %v2230_v20   ;;  %v1463_v19 = vphi %v1889_v19, %v2229_v19  }
  0xe7   : > { %530 = vmatpush1.msra.mxu0 %v1615_v15  ;;  %577 = vmatprep.mubr.f32.mxu0 %v1490_v21  ;;  %s506_s4 = scalar_lea.vmem [#allocation2], %s1214_s3  ;;  %s501_s1 = sadd.s32 1, %s1471_s1  }
  0xe8   : > { %531 = vmatprep.subr.mxu0 %v1610_v14  ;;  %p498_p5 = scmp.ge.s32.totalorder %s501_s1, 20  }
  0xe9   : > { %532 = vmatpush1.msra.mxu0 %v1605_v13  ;;  %v1925_v26 = vld [vmem:[#allocation4] sm:$0xff] (%p498_p5)  ;;  %v1927_v29 = vld [vmem:[#allocation4 + $0x8] sm:$0xff] (%p498_p5)  ;;  %v1929_v59 = vld [vmem:[#allocation4 + $0x10] sm:$0xff] (%p498_p5)  ;;  %s1970_s21 = smov (%p498_p5), 0  }
  0xea   : > { %533 = vmatprep.subr.mxu0 %v1600_v12  ;;  %v1931_v40 = vld [vmem:[#allocation4 + $0x18] sm:$0xff] (%p498_p5)  ;;  %v1933_v28 = vld [vmem:[#allocation4 + $0x20] sm:$0xff] (%p498_p5)  ;;  %v1935_v44 = vld [vmem:[#allocation4 + $0x28] sm:$0xff] (%p498_p5) }
  0xeb   : > { %534 = vmatpush1.msra.mxu0 %v1595_v11  ;;  %v1937_v30 = vld [vmem:[#allocation4 + $0x30] sm:$0xff] (%p498_p5)  ;;  %v1939_v31 = vld [vmem:[#allocation4 + $0x38] sm:$0xff] (%p498_p5)  ;;  %v1941_v62 = vld [vmem:[#allocation4 + $0x40] sm:$0xff] (%p498_p5) }
  0xec   : > { %535 = vmatprep.subr.mxu0 %v1590_v10  ;;  %v508_v36 = vld [vmem:[%s506_s4 + $0x8] sm:$0xff]  ;;  %v507_v43 = vld [vmem:[%s506_s4] sm:$0xff]  ;;  %v1943_v45 = vld [vmem:[#allocation4 + $0x48] sm:$0xff] (%p498_p5) }
  0xed   : > { %536 = vmatpush1.msra.mxu0 %v1585_v9  ;;  %v2231_v9 = vld [vmem:[#allocation7_spill] sm:$0xff] (%p498_p5) }
  0xee   : > { %537 = vmatprep.subr.mxu0 %v1580_v8 }
  0xef   : > { %538 = vmatpush1.msra.mxu0 %v1575_v7  ;;  %v1960_v7 = vld [vmem:[%s2223_s5] sm:$0x3] (%p498_p5) }
  0xf0   : > { %539 = vmatprep.subr.mxu0 %v1570_v6  ;;  %v1955_v6 = vld [vmem:[#allocation4 + $0x78] sm:$0xff] (%p498_p5)  ;;  %v637_v8 = vrot.slane (%p498_p5), %v1960_v7, %v1706_v58  ;;  %v641_v10 = vrot.slane (%p498_p5), %v1960_v7, %v2231_v9 }
  0xf1   : > { %540 = vmatpush1.msra.mxu0 %v1565_v5  ;;  %v1953_v5 = vld [vmem:[#allocation4 + $0x70] sm:$0xff] (%p498_p5) }
  0xf2   : > { %541 = vmatprep.subr.mxu0 %v1560_v4  ;;  %v1951_v4 = vld [vmem:[#allocation4 + $0x68] sm:$0xff] (%p498_p5) }
  0xf3   : > { %542 = vmatpush1.msra.mxu0 %v1555_v3  ;;  %v1949_v3 = vld [vmem:[#allocation4 + $0x60] sm:$0xff] (%p498_p5) }
  0xf4   : > { %543 = vmatprep.subr.mxu0 %v1550_v2  ;;  %v1947_v2 = vld [vmem:[#allocation4 + $0x58] sm:$0xff] (%p498_p5) }
  0xf5   : > { %544 = vmatpush1.msra.mxu0 %v1545_v1  ;;  %v1945_v1 = vld [vmem:[#allocation4 + $0x50] sm:$0xff] (%p498_p5) }
  0xf6   : > { %1176 = vmatmul.mubr.msk.f32.vlgmr.msra.gmra.mxu0 %vm509_vm0, %v1467_v20 }
 0x1b6   : > { %v579_v22 = vpop.f32.mrf.mxu0 }
 0x1b7   : > { %v584_v61 = vadd.f32 %v579_v22, %v507_v43 }
 0x1b8   : > { %v581_v55 = vpop.f32.mrf.mxu0 }
 0x1b9   : > { %v585_v60 = vadd.f32 %v581_v55, %v508_v36  ;;  %v1177_v18 = vmul.f32 -1.442695, %v584_v61 }
 0x1bb   : > { %1391 = vtanh.f32 %v585_v60  ;;  %v1178_v51 = vmul.f32 -1.442695, %v585_v60 }
 0x1bc   : > { %1393 = vpow2.f32 %v1177_v18 }
 0x1c8   : > { %v1392_v42 = vpop.eup %1391 }
 0x1c9   : > { %601 = vrot.lane.b32.xlu0 %v1392_v42, %s1491_s18  ;;  %v1394_v37 = vpop.eup %1393 }
 0x1ca   : > { %v589_v46 = vadd.f32 1.0, %v1394_v37 }
 0x1cc   : > { %1395 = vrcp.f32 %v589_v46 }
 0x1d9   : > { %v1396_v39 = vpop.eup %1395 }
 0x1da   : > { %v599_v50 = vmul.f32 %v1463_v19, %v1396_v39 }
 0x23b   : > { %v602_v56 = vpop.permute.xlu0 %601 }
 0x23c   : > { %v604_v41 = vmul.f32 %v1396_v39, %v602_v56 }
 0x23e   : > { %606 = vrot.lane.b32.xlu0 %v604_v41, %s1491_s18 }
 0x2b0   : > { %v607_v57 = vpop.permute.xlu0 %606 }
 0x2b1   : > { %v609_v47 = vadd.f32 %v607_v57, %v599_v50  }
 0x2b3   : > { %1397 = vtanh.f32 %v609_v47  ;;  %v2229_v19 = vmov %v609_v47 }
 0x2b4   : > { %1399 = vpow2.f32 %v1178_v51 }
 0x2c0   : > { %v1398_v52 = vpop.eup %1397 }
 0x2c1   : > { %612 = vrot.lane.b32.xlu1 %v1398_v52, %s1491_s18  ;;  %v1400_v27 = vpop.eup %1399 }
 0x2c2   : > { %v595_v24 = vadd.f32 1.0, %v1400_v27 }
 0x2c4   : > { %1401 = vrcp.f32 %v595_v24 }
 0x2d1   : > { %v1402_v25 = vpop.eup %1401 }
 0x332   :  { %500 = sbr.rel (!%p498_p5) target bundleno = 230 (0xe6), region = 73 }
 0x333   : > { %v613_v23 = vpop.permute.xlu1 %612 }
 0x334   : > { %v615_v38 = vmul.f32 %v1402_v25, %v613_v23  }
 0x336   : > { %v2230_v20 = vmov %v615_v38 }
 0x337 LB: > { %672 = vmatprep.subr.mxu0 %v1955_v6  ;;  %v1492_v11 = vmov 0.0   ;;  %s1493_s5 = smov 64   ;;  %s1182_s22 = sshll.u32 %s1483_s21, 3  ;;  %s1483_s21 = sphi %s1970_s21, %s649_s21   ;;  %v1479_v38 = vphi %v615_v38, %v756_v38   ;;  %v1475_v47 = vphi %v609_v47, %v750_v47  }
 0x338   : > { %673 = vmatpush1.msra.mxu0 %v1953_v5  ;;  %720 = vmatprep.mubr.f32.mxu0 %v1492_v11  ;;  %s758_s23 = scalar_lea.vmem [#allocation3], %s1182_s22  ;;  %s649_s21 = sadd.s32 1, %s1483_s21  }
 0x339   : > { %674 = vmatprep.subr.mxu0 %v1951_v4  ;;  %p646_p6 = scmp.ge.s32.totalorder %s649_s21, 30  }
 0x33a   : > { %675 = vmatpush1.msra.mxu0 %v1949_v3  ;;  %v797_v36 = vld [vmem:[%s2224_s6 + $0x38] sm:$0xff] (%p646_p6)  ;;  %v796_v55 = vld [vmem:[%s2224_s6 + $0x30] sm:$0xff] (%p646_p6)  ;;  %v795_v60 = vld [vmem:[%s2224_s6 + $0x28] sm:$0xff] (%p646_p6)  ;;  %vm1111_vm1 = vcmask (%p646_p6), 15360  }
 0x33b   : > { %676 = vmatprep.subr.mxu0 %v1947_v2  ;;  %1314 = vmatprep.subr.mxu1 (%p646_p6), %v797_v36  ;;  %v794_v58 = vld [vmem:[%s2224_s6 + $0x20] sm:$0xff] (%p646_p6)  ;;  %v793_v42 = vld [vmem:[%s2224_s6 + $0x18] sm:$0xff] (%p646_p6)  ;;  %v792_v43 = vld [vmem:[%s2224_s6 + $0x10] sm:$0xff] (%p646_p6) }
 0x33c   : > { %677 = vmatpush1.msra.mxu0 %v1945_v1  ;;  %1322 = vmatpush3.msra.mxu1 (%p646_p6), %v797_v36  ;;  %v791_v61 = vld [vmem:[%s2224_s6 + $0x8] sm:$0xff] (%p646_p6)  ;;  %v790_v18 = vld [vmem:[%s2224_s6] sm:$0xff] (%p646_p6) }
 0x33d   : > { %678 = vmatprep.subr.mxu0 %v1943_v45  ;;  %1315 = vmatprep.subr.mxu1 (%p646_p6), %v796_v55  ;;  %v2066_v6 = vld [vmem:[%s2225_s7] ss:$0 sm:$0xff] (%p646_p6) }
 0x33e   : > { %679 = vmatpush1.msra.mxu0 %v1941_v62  ;;  %1323 = vmatpush3.msra.mxu1 (%p646_p6), %v796_v55 }
 0x33f   : > { %680 = vmatprep.subr.mxu0 %v1939_v31  ;;  %1316 = vmatprep.subr.mxu1 (%p646_p6), %v795_v60 }
 0x340   : > { %681 = vmatpush1.msra.mxu0 %v1937_v30  ;;  %1324 = vmatpush3.msra.mxu1 (%p646_p6), %v795_v60 }
 0x341   : > { %682 = vmatprep.subr.mxu0 %v1935_v44  ;;  %1317 = vmatprep.subr.mxu1 (%p646_p6), %v794_v58 }
 0x342   : > { %683 = vmatpush1.msra.mxu0 %v1933_v28  ;;  %1325 = vmatpush3.msra.mxu1 (%p646_p6), %v794_v58 }
 0x343   : > { %684 = vmatprep.subr.mxu0 %v1931_v40  ;;  %1318 = vmatprep.subr.mxu1 (%p646_p6), %v793_v42 }
 0x344   : > { %685 = vmatpush1.msra.mxu0 %v1929_v59  ;;  %1326 = vmatpush3.msra.mxu1 (%p646_p6), %v793_v42 }
 0x345   : > { %686 = vmatprep.subr.mxu0 %v1927_v29  ;;  %1319 = vmatprep.subr.mxu1 (%p646_p6), %v792_v43 }
 0x346   : > { %687 = vmatpush1.msra.mxu0 %v1925_v26  ;;  %1327 = vmatpush3.msra.mxu1 (%p646_p6), %v792_v43 }
 0x347   : > { %1179 = vmatmul.mubr.msk.f32.vlgmr.msra.gmra.mxu0 %vm509_vm0, %v1479_v38  ;;  %1253 = vmatprep.subr.mxu0 (%p646_p6), %v797_v36 }
 0x348   :  { %1254 = vmatpush3.msra.mxu0 (%p646_p6), %v797_v36  ;;  %1320 = vmatprep.subr.mxu1 (%p646_p6), %v791_v61 }
 0x349   :  { %1255 = vmatprep.subr.mxu0 (%p646_p6), %v796_v55  ;;  %1328 = vmatpush3.msra.mxu1 (%p646_p6), %v791_v61 }
 0x34a   :  { %1256 = vmatpush3.msra.mxu0 (%p646_p6), %v796_v55  ;;  %1321 = vmatprep.subr.mxu1 (%p646_p6), %v790_v18 }
 0x34b   :  { %1257 = vmatprep.subr.mxu0 (%p646_p6), %v795_v60  ;;  %1329 = vmatpush3.msra.mxu1 (%p646_p6), %v790_v18 }
 0x34c   :  { %1258 = vmatpush3.msra.mxu0 (%p646_p6), %v795_v60 }
 0x34d   :  { %1259 = vmatprep.subr.mxu0 (%p646_p6), %v794_v58 }
 0x34e   :  { %1260 = vmatpush3.msra.mxu0 (%p646_p6), %v794_v58 }
 0x34f   :  { %1261 = vmatprep.subr.mxu0 (%p646_p6), %v793_v42 }
 0x350   :  { %1262 = vmatpush3.msra.mxu0 (%p646_p6), %v793_v42 }
 0x351   :  { %1263 = vmatprep.subr.mxu0 (%p646_p6), %v792_v43 }
 0x352   :  { %1264 = vmatpush3.msra.mxu0 (%p646_p6), %v792_v43 }
 0x353   :  { %1265 = vmatprep.subr.mxu0 (%p646_p6), %v791_v61 }
 0x354   :  { %1266 = vmatpush3.msra.mxu0 (%p646_p6), %v791_v61 }
 0x355   :  { %1267 = vmatprep.subr.mxu0 (%p646_p6), %v790_v18 }
 0x356   :  { %1268 = vmatpush3.msra.mxu0 (%p646_p6), %v790_v18 }
 0x407   : > { %v722_v12 = vpop.f32.mrf.mxu0 }
 0x408   : > { %v723_v0 = vadd.f32 %v722_v12, %v637_v8 }
 0x409   : > { %v724_v13 = vpop.f32.mrf.mxu0 }
 0x40a   : > { %v725_v15 = vadd.f32 %v724_v13, %v641_v10  ;;  %v1180_v63 = vmul.f32 -1.442695, %v723_v0 }
 0x40c   : > { %1403 = vtanh.f32 %v725_v15  ;;  %v1181_v35 = vmul.f32 -1.442695, %v725_v15 }
 0x40d   : > { %1405 = vpow2.f32 %v1180_v63 }
 0x419   : > { %v1404_v16 = vpop.eup %1403 }
 0x41a   : > { %742 = vrot.lane.b32.xlu0 %v1404_v16, %s1493_s5  ;;  %v1406_v17 = vpop.eup %1405 }
 0x41b   : > { %v730_v32 = vadd.f32 1.0, %v1406_v17 }
 0x41d   : > { %1407 = vrcp.f32 %v730_v32 }
 0x42a   : > { %v1408_v48 = vpop.eup %1407 }
 0x42b   : > { %v740_v34 = vmul.f32 %v1475_v47, %v1408_v48 }
 0x48c   : > { %v743_v53 = vpop.permute.xlu0 %742 }
 0x48d   : > { %v745_v33 = vmul.f32 %v1408_v48, %v743_v53 }
 0x48f   : > { %747 = vrot.lane.b32.xlu0 %v745_v33, %s1493_s5 }
 0x501   : > { %v748_v54 = vpop.permute.xlu0 %747 }
 0x502   : > { %v750_v47 = vadd.f32 %v748_v54, %v740_v34  }
 0x504   : > { %1409 = vtanh.f32 %v750_v47 }
 0x505   : > { %1411 = vpow2.f32 %v1181_v35 }
 0x511   : > { %v1410_v49 = vpop.eup %1409 }
 0x512   : > { %753 = vrot.lane.b32.xlu1 %v1410_v49, %s1493_s5  ;;  %v1412_v19 = vpop.eup %1411 }
 0x513   : > { %v736_v20 = vadd.f32 1.0, %v1412_v19 }
 0x515   : > { %1413 = vrcp.f32 %v736_v20 }
 0x522   : > { %v1414_v21 = vpop.eup %1413 }
 0x583   :  { %648 = sbr.rel (!%p646_p6) target bundleno = 823 (0x337), region = 84 }
 0x584   : > { %v754_v22 = vpop.permute.xlu1 %753 }
 0x585   : > { %v756_v38 = vmul.f32 %v1414_v21, %v754_v22  }
 0x587   : > { %759 = vst.msk [vmem:[%s758_s23] sm:$0xff] %vm509_vm0, %v756_v38 }
 0x58e   :  { %v760_v37 = vld [vmem:[#allocation3] sm:$0xff]  ;;  %v761_v46 = vld [vmem:[#allocation3 + $0x8] sm:$0xff]  ;;  %v762_v56 = vld [vmem:[#allocation3 + $0x10] sm:$0xff] }
 0x58f   :  { %1269 = vmatprep.mubr.msk.f32.mxu0 %vm509_vm0, %v760_v37  ;;  %v776_v39 = vld [vmem:[#allocation3 + $0x80] sm:$0xff]  ;;  %v777_v41 = vld [vmem:[#allocation3 + $0x88] sm:$0xff]  ;;  %v778_v50 = vld [vmem:[#allocation3 + $0x90] sm:$0xff] }
 0x590   :  { %1270 = vmatmul.mubr.msk.f32.vlgmr.msra.gmra.mxu0 %vm509_vm0, %v761_v46  ;;  %1293 = vmatprep.mubr.msk.f32.mxu1 %vm509_vm0, %v776_v39  ;;  %v763_v57 = vld [vmem:[#allocation3 + $0x18] sm:$0xff]  ;;  %v764_v47 = vld [vmem:[#allocation3 + $0x20] sm:$0xff]  ;;  %v765_v27 = vld [vmem:[#allocation3 + $0x28] sm:$0xff] }
 0x591   :  { %1272 = vmatprep.mubr.msk.f32.mxu0 %vm509_vm0, %v762_v56  ;;  %1294 = vmatmul.mubr.msk.f32.vlgmr.msra.gmra.mxu1 %vm509_vm0, %v777_v41  ;;  %v779_v52 = vld [vmem:[#allocation3 + $0x98] sm:$0xff]  ;;  %v780_v51 = vld [vmem:[#allocation3 + $0xa0] sm:$0xff]  ;;  %v766_v24 = vld [vmem:[#allocation3 + $0x30] sm:$0xff] }
 0x592   :  { %1296 = vmatprep.mubr.msk.f32.mxu1 %vm509_vm0, %v778_v50  ;;  %v781_v25 = vld [vmem:[#allocation3 + $0xa8] sm:$0xff]  ;;  %v782_v23 = vld [vmem:[#allocation3 + $0xb0] sm:$0xff]  ;;  %v767_v38 = vld [vmem:[#allocation3 + $0x38] sm:$0xff] }
 0x593   :  { %v768_v26 = vld [vmem:[#allocation3 + $0x40] sm:$0xff]  ;;  %v783_v29 = vld [vmem:[#allocation3 + $0xb8] sm:$0xff]  ;;  %v769_v40 = vld [vmem:[#allocation3 + $0x48] sm:$0xff] }
 0x594   :  { %1273 = vmatmul.mubr.msk.f32.gmra.mxu0 %vm509_vm0, %v763_v57  ;;  %v784_v59 = vld [vmem:[#allocation3 + $0xc0] sm:$0xff]  ;;  %v770_v28 = vld [vmem:[#allocation3 + $0x50] sm:$0xff]  ;;  %v785_v44 = vld [vmem:[#allocation3 + $0xc8] sm:$0xff] }
 0x595   :  { %1275 = vmatprep.mubr.msk.f32.mxu0 %vm509_vm0, %v764_v47  ;;  %1297 = vmatmul.mubr.msk.f32.gmra.mxu1 %vm509_vm0, %v779_v52  ;;  %v786_v30 = vld [vmem:[#allocation3 + $0xd0] sm:$0xff]  ;;  %v771_v31 = vld [vmem:[#allocation3 + $0x58] sm:$0xff]  ;;  %v772_v62 = vld [vmem:[#allocation3 + $0x60] sm:$0xff] }
 0x596   :  { %1299 = vmatprep.mubr.msk.f32.mxu1 %vm509_vm0, %v780_v51  ;;  %v787_v45 = vld [vmem:[#allocation3 + $0xd8] sm:$0xff]  ;;  %v788_v1 = vld [vmem:[#allocation3 + $0xe0] sm:$0xff]  ;;  %v773_v2 = vld [vmem:[#allocation3 + $0x68] sm:$0xff] }
 0x597   :  { %v774_v3 = vld [vmem:[#allocation3 + $0x70] sm:$0xff]  ;;  %v789_v4 = vld [vmem:[#allocation3 + $0xe8] sm:$0xff]  ;;  %v775_v5 = vld [vmem:[#allocation3 + $0x78] sm:$0xff] }
 0x598   :  { %1276 = vmatmul.mubr.msk.f32.gmra.mxu0 %vm509_vm0, %v765_v27 }
 0x599   :  { %1278 = vmatprep.mubr.msk.f32.mxu0 %vm509_vm0, %v766_v24  ;;  %1300 = vmatmul.mubr.msk.f32.gmra.mxu1 %vm509_vm0, %v781_v25 }
 0x59a   :  { %1302 = vmatprep.mubr.msk.f32.mxu1 %vm509_vm0, %v782_v23 }
 0x59c   :  { %1279 = vmatmul.mubr.msk.f32.gmra.mxu0 %vm509_vm0, %v767_v38 }
 0x59d   :  { %1281 = vmatprep.mubr.msk.f32.mxu0 %vm509_vm0, %v768_v26  ;;  %1303 = vmatmul.mubr.msk.f32.gmra.mxu1 %vm509_vm0, %v783_v29 }
 0x59e   :  { %1305 = vmatprep.mubr.msk.f32.mxu1 %vm509_vm0, %v784_v59 }
 0x5a0   :  { %1282 = vmatmul.mubr.msk.f32.gmra.mxu0 %vm509_vm0, %v769_v40 }
 0x5a1   :  { %1284 = vmatprep.mubr.msk.f32.mxu0 %vm509_vm0, %v770_v28  ;;  %1306 = vmatmul.mubr.msk.f32.gmra.mxu1 %vm509_vm0, %v785_v44 }
 0x5a2   :  { %1308 = vmatprep.mubr.msk.f32.mxu1 %vm509_vm0, %v786_v30 }
 0x5a4   :  { %1285 = vmatmul.mubr.msk.f32.gmra.mxu0 %vm509_vm0, %v771_v31 }
 0x5a5   :  { %1287 = vmatprep.mubr.msk.f32.mxu0 %vm509_vm0, %v772_v62  ;;  %1309 = vmatmul.mubr.msk.f32.gmra.mxu1 %vm509_vm0, %v787_v45 }
 0x5a6   :  { %1311 = vmatprep.mubr.msk.f32.mxu1 %vm509_vm0, %v788_v1 }
 0x5a8   :  { %1288 = vmatmul.mubr.msk.f32.gmra.mxu0 %vm509_vm0, %v773_v2 }
 0x5a9   :  { %1290 = vmatprep.mubr.msk.f32.mxu0 %vm509_vm0, %v774_v3  ;;  %1312 = vmatmul.mubr.msk.f32.gmra.mxu1 %vm509_vm0, %v789_v4 }
 0x5ac   :  { %1291 = vmatmul.mubr.msk.f32.gmra.mxu0 %vm509_vm0, %v775_v5 }
 0x650   :  { %v1271_v7 = vpop.f32.mrf.mxu0 }
 0x651   :  { %v968_v8 = vadd.f32 %v1271_v7, %v2066_v6  ;;  %v1295_v10 = vpop.f32.mrf.mxu1 }
 0x652   :  { %v962_v9 = vpop.f32.mrf.mxu0  ;;  %v1048_v12 = vadd.f32 %v1295_v10, %v2066_v6 }
 0x653   :  { %1113 = vst.msk [vmem:[%s2226_s8 + $0x8] sm:$0xff] %vm1111_vm1, %v968_v8  ;;  %v963_v11 = vadd.f32 %v2066_v6, %v962_v9  ;;  %v1042_v14 = vpop.f32.mrf.mxu1 }
 0x654   :  { %v1274_v13 = vpop.f32.mrf.mxu0  ;;  %1129 = vst.msk [vmem:[%s2226_s8 + $0x88] sm:$0xff] %vm1111_vm1, %v1048_v12  ;;  %v1043_v16 = vadd.f32 %v2066_v6, %v1042_v14 }
 0x655   :  { %1112 = vst.msk [vmem:[%s2226_s8] sm:$0xff] %vm1111_vm1, %v963_v11  ;;  %v978_v15 = vadd.f32 %v1274_v13, %v2066_v6  ;;  %v1298_v63 = vpop.f32.mrf.mxu1 }
 0x656   :  { %v972_v0 = vpop.f32.mrf.mxu0  ;;  %1128 = vst.msk [vmem:[%s2226_s8 + $0x80] sm:$0xff] %vm1111_vm1, %v1043_v16  ;;  %v1058_v32 = vadd.f32 %v1298_v63, %v2066_v6 }
 0x657   :  { %1115 = vst.msk [vmem:[%s2226_s8 + $0x18] sm:$0xff] %vm1111_vm1, %v978_v15  ;;  %v973_v17 = vadd.f32 %v2066_v6, %v972_v0  ;;  %v1052_v53 = vpop.f32.mrf.mxu1 }
 0x658   :  { %v1277_v48 = vpop.f32.mrf.mxu0  ;;  %1131 = vst.msk [vmem:[%s2226_s8 + $0x98] sm:$0xff] %vm1111_vm1, %v1058_v32  ;;  %v1053_v34 = vadd.f32 %v2066_v6, %v1052_v53 }
 0x659   :  { %1114 = vst.msk [vmem:[%s2226_s8 + $0x10] sm:$0xff] %vm1111_vm1, %v973_v17  ;;  %v988_v33 = vadd.f32 %v1277_v48, %v2066_v6  ;;  %v1301_v49 = vpop.f32.mrf.mxu1 }
 0x65a   :  { %v982_v54 = vpop.f32.mrf.mxu0  ;;  %1130 = vst.msk [vmem:[%s2226_s8 + $0x90] sm:$0xff] %vm1111_vm1, %v1053_v34  ;;  %v1068_v19 = vadd.f32 %v1301_v49, %v2066_v6 }
 0x65b   :  { %1117 = vst.msk [vmem:[%s2226_s8 + $0x28] sm:$0xff] %vm1111_vm1, %v988_v33  ;;  %v983_v35 = vadd.f32 %v2066_v6, %v982_v54  ;;  %v1062_v21 = vpop.f32.mrf.mxu1 }
 0x65c   :  { %v1280_v20 = vpop.f32.mrf.mxu0  ;;  %1133 = vst.msk [vmem:[%s2226_s8 + $0xa8] sm:$0xff] %vm1111_vm1, %v1068_v19  ;;  %v1063_v36 = vadd.f32 %v2066_v6, %v1062_v21 }
 0x65d   :  { %1116 = vst.msk [vmem:[%s2226_s8 + $0x20] sm:$0xff] %vm1111_vm1, %v983_v35  ;;  %v998_v22 = vadd.f32 %v1280_v20, %v2066_v6  ;;  %v1304_v60 = vpop.f32.mrf.mxu1 }
 0x65e   :  { %v992_v55 = vpop.f32.mrf.mxu0  ;;  %1132 = vst.msk [vmem:[%s2226_s8 + $0xa0] sm:$0xff] %vm1111_vm1, %v1063_v36  ;;  %v1078_v42 = vadd.f32 %v1304_v60, %v2066_v6 }
 0x65f   :  { %1119 = vst.msk [vmem:[%s2226_s8 + $0x38] sm:$0xff] %vm1111_vm1, %v998_v22  ;;  %v993_v58 = vadd.f32 %v2066_v6, %v992_v55  ;;  %v1072_v61 = vpop.f32.mrf.mxu1 }
 0x660   :  { %v1283_v43 = vpop.f32.mrf.mxu0  ;;  %1135 = vst.msk [vmem:[%s2226_s8 + $0xb8] sm:$0xff] %vm1111_vm1, %v1078_v42  ;;  %v1073_v37 = vadd.f32 %v2066_v6, %v1072_v61 }
 0x661   :  { %1118 = vst.msk [vmem:[%s2226_s8 + $0x30] sm:$0xff] %vm1111_vm1, %v993_v58  ;;  %v1008_v18 = vadd.f32 %v1283_v43, %v2066_v6  ;;  %v1307_v39 = vpop.f32.mrf.mxu1 }
 0x662   :  { %v1002_v46 = vpop.f32.mrf.mxu0  ;;  %1134 = vst.msk [vmem:[%s2226_s8 + $0xb0] sm:$0xff] %vm1111_vm1, %v1073_v37  ;;  %v1088_v41 = vadd.f32 %v1307_v39, %v2066_v6 }
 0x663   :  { %1121 = vst.msk [vmem:[%s2226_s8 + $0x48] sm:$0xff] %vm1111_vm1, %v1008_v18  ;;  %v1003_v56 = vadd.f32 %v2066_v6, %v1002_v46  ;;  %v1082_v57 = vpop.f32.mrf.mxu1 }
 0x664   :  { %v1286_v50 = vpop.f32.mrf.mxu0  ;;  %1137 = vst.msk [vmem:[%s2226_s8 + $0xc8] sm:$0xff] %vm1111_vm1, %v1088_v41  ;;  %v1083_v52 = vadd.f32 %v2066_v6, %v1082_v57 }
 0x665   :  { %1120 = vst.msk [vmem:[%s2226_s8 + $0x40] sm:$0xff] %vm1111_vm1, %v1003_v56  ;;  %v1018_v47 = vadd.f32 %v1286_v50, %v2066_v6  ;;  %v1310_v27 = vpop.f32.mrf.mxu1 }
 0x666   :  { %v1012_v51 = vpop.f32.mrf.mxu0  ;;  %1136 = vst.msk [vmem:[%s2226_s8 + $0xc0] sm:$0xff] %vm1111_vm1, %v1083_v52  ;;  %v1098_v25 = vadd.f32 %v1310_v27, %v2066_v6 }
 0x667   :  { %1123 = vst.msk [vmem:[%s2226_s8 + $0x58] sm:$0xff] %vm1111_vm1, %v1018_v47  ;;  %v1013_v24 = vadd.f32 %v2066_v6, %v1012_v51  ;;  %v1092_v38 = vpop.f32.mrf.mxu1 }
 0x668   :  { %v1289_v23 = vpop.f32.mrf.mxu0  ;;  %1139 = vst.msk [vmem:[%s2226_s8 + $0xd8] sm:$0xff] %vm1111_vm1, %v1098_v25  ;;  %v1093_v29 = vadd.f32 %v2066_v6, %v1092_v38 }
 0x669   :  { %1122 = vst.msk [vmem:[%s2226_s8 + $0x50] sm:$0xff] %vm1111_vm1, %v1013_v24  ;;  %v1028_v26 = vadd.f32 %v1289_v23, %v2066_v6  ;;  %v1313_v40 = vpop.f32.mrf.mxu1 }
 0x66a   :  { %v1022_v59 = vpop.f32.mrf.mxu0  ;;  %1138 = vst.msk [vmem:[%s2226_s8 + $0xd0] sm:$0xff] %vm1111_vm1, %v1093_v29  ;;  %v1108_v44 = vadd.f32 %v1313_v40, %v2066_v6 }
 0x66b   :  { %1125 = vst.msk [vmem:[%s2226_s8 + $0x68] sm:$0xff] %vm1111_vm1, %v1028_v26  ;;  %v1023_v28 = vadd.f32 %v2066_v6, %v1022_v59  ;;  %v1102_v31 = vpop.f32.mrf.mxu1 }
 0x66c   :  { %v1292_v30 = vpop.f32.mrf.mxu0  ;;  %1141 = vst.msk [vmem:[%s2226_s8 + $0xe8] sm:$0xff] %vm1111_vm1, %v1108_v44  ;;  %v1103_v45 = vadd.f32 %v2066_v6, %v1102_v31 }
 0x66d   :  { %1124 = vst.msk [vmem:[%s2226_s8 + $0x60] sm:$0xff] %vm1111_vm1, %v1023_v28  ;;  %v1038_v62 = vadd.f32 %v1292_v30, %v2066_v6 }
 0x66e   :  { %v1032_v1 = vpop.f32.mrf.mxu0  ;;  %1140 = vst.msk [vmem:[%s2226_s8 + $0xe0] sm:$0xff] %vm1111_vm1, %v1103_v45 }
 0x66f   :  { %1127 = vst.msk [vmem:[%s2226_s8 + $0x78] sm:$0xff] %vm1111_vm1, %v1038_v62  ;;  %v1033_v2 = vadd.f32 %v2066_v6, %v1032_v1 }
 0x671   :  { %1126 = vst.msk [vmem:[%s2226_s8 + $0x70] sm:$0xff] %vm1111_vm1, %v1033_v2 }
 0x672   :  { %1146 = vsyncpa [#allocation5], 1 }

</bundles_post_ra>
